<compile_context>
chip_gen: v6e
topology: v6e:2x2x1
jax: 0.10.0
libtpu: 0.0.40
codegen_flags: <defaults>
</compile_context>

<pallas_src>
import jax
import jax.numpy as jnp
from jax.experimental import pallas as pl
from jax.experimental.pallas import tpu as pltpu


def _eltwise_kernel(x_ref, w_ref, o_ref):
    # x_ref: (TB, TN) tile, w_ref: (1, TN) resident row -> broadcast mul on VPU.
    o_ref[...] = x_ref[...] * w_ref[...]


def _round_up(a: int, b: int) -> int:
    return pl.cdiv(a, b) * b


def _sublane_multiple(dtype) -> int:
    # f32 -> 8 sublanes per vreg, bf16 -> 16, int8/fp8 -> 32.
    return max(8, 32 // jnp.dtype(dtype).itemsize)


_TARGET_TILE_BYTES = 8 * 1024 * 1024   # per x tile; ~4x this lives in VMEM (in+out, 2-buffered)
_VMEM_CAP_BYTES = 48 * 1024 * 1024     # safe on v7x (64 MiB physical) and v5e/v6e (128 MiB)


def _choose_tiles(B, N_pad, itemsize, sublane):
    # Lane axis: full padded width if one sublane-row-group of it fits the
    # budget, otherwise the largest multiple of 128 that does.
    if N_pad * itemsize * sublane <= _TARGET_TILE_BYTES:
        tn = N_pad
    else:
        tn = max(128, (_TARGET_TILE_BYTES // (itemsize * sublane)) // 128 * 128)
    row_bytes = tn * itemsize
    tb = max(sublane, (_TARGET_TILE_BYTES // row_bytes) // sublane * sublane)
    tb = min(tb, _round_up(B, sublane))
    # Keep >= 8 row blocks when the batch allows it (feeds v7x's 2 TensorCores).
    if B >= 8 * sublane:
        tb = min(tb, max(sublane, (B // 8) // sublane * sublane))
    return tb, tn


def _trainable_eltwise_pallas(x: jax.Array, weights: jax.Array) -> jax.Array:
    """x: (B, N); weights: (1, N) or (N,).  Returns x * weights (broadcast over B)."""
    B, N = x.shape
    weights = jnp.asarray(weights).reshape(1, -1)
    assert weights.shape[1] == N, "weight feature dim must match x"

    out_dtype = jnp.result_type(x.dtype, weights.dtype)
    x = x.astype(out_dtype)
    w = weights.astype(out_dtype)

    itemsize = jnp.dtype(out_dtype).itemsize
    sublane = _sublane_multiple(out_dtype)

    N_pad = _round_up(N, 128)
    tb, tn = _choose_tiles(B, N_pad, itemsize, sublane)
    B_pad = _round_up(B, tb)

    if (B_pad, N_pad) != (B, N):
        x = jnp.pad(x, ((0, B_pad - B), (0, N_pad - N)))
    if N_pad != N:
        w = jnp.pad(w, ((0, 0), (0, N_pad - N)))

    grid = (B_pad // tb, N_pad // tn)

    tile_bytes = tb * tn * itemsize
    # 2 double-buffered tiles (x in + out) + weight row + headroom, clamped to
    # a range that is safe on every TPU generation.
    vmem_bytes = int(min(_VMEM_CAP_BYTES,
                         max(32 * 1024 * 1024,
                             4 * tile_bytes + 4 * tn * itemsize + (4 << 20))))

    out = pl.pallas_call(
        _eltwise_kernel,
        out_shape=jax.ShapeDtypeStruct((B_pad, N_pad), out_dtype),
        grid_spec=pltpu.PrefetchScalarGridSpec(
            num_scalar_prefetch=0,
            grid=grid,
            in_specs=[
                pl.BlockSpec((tb, tn), lambda i, j: (i, j)),   # x tile (lane-dense)
                # Weight row: in the common case tn == N_pad, so j is always 0
                # and the block index is constant -> fetched once, resident.
                pl.BlockSpec((1, tn), lambda i, j: (0, j)),
            ],
            out_specs=pl.BlockSpec((tb, tn), lambda i, j: (i, j)),
        ),
        compiler_params=pltpu.CompilerParams(
            dimension_semantics=("parallel", "parallel"),
            vmem_limit_bytes=vmem_bytes),
    )(x, w)

    if (B_pad, N_pad) != (B, N):
        out = out[:B, :N]
    return out


def trainable_eltwise(x: jax.Array, weights: jax.Array,
                      *, min_pallas_bytes: int = 0) -> jax.Array:
    """Forward pass of TrainableEltwiseLayer.

    Production call sites should pass min_pallas_bytes ~ 1 MiB: below that the
    pallas_call fixed launch/pipeline cost dominates and a plain XLA-fused
    multiply is faster.  Default 0 so the demo exercises the kernel.
    """
    nbytes = x.size * jnp.dtype(x.dtype).itemsize
    if nbytes < min_pallas_bytes:
        return x * jnp.asarray(weights).reshape(1, -1)
    return _trainable_eltwise_pallas(x, weights)


if __name__ == "__main__":
    key = jax.random.PRNGKey(0)
    kx, kw = jax.random.split(key)

    B, N = 16, 256  # small demo shapes: batch=16, feature dim n=256
    x = jax.random.normal(kx, (B, N), dtype=jnp.float32)
    # Deterministic analogue of the module's torch.randn((1, n)) parameter.
    weights = jax.random.normal(kw, (1, N), dtype=jnp.float32)

    out = trainable_eltwise(x, weights)
    out = jax.block_until_ready(out)

    # Correctness check against plain-JAX broadcast multiply.
    ref = x * weights
    assert out.shape == (B, N)
    assert out.dtype == ref.dtype
    assert jnp.allclose(out, ref, atol=1e-6, rtol=1e-6), "mismatch vs reference"

    print("KERNEL_OK")
</pallas_src>

<mosaic_0001>
module attributes {stable_mosaic.version = 11 : i64} {
  func.func @_eltwise_kernel(%arg0: i32, %arg1: i32, %arg2: memref<16x256xf32, #tpu.memory_space<vmem>>, %arg3: memref<1x256xf32, #tpu.memory_space<vmem>>, %arg4: memref<16x256xf32, #tpu.memory_space<vmem>>) attributes {dimension_semantics = [#tpu.dimension_semantics<parallel>, #tpu.dimension_semantics<parallel>], iteration_bounds = array<i64: 1, 1>, scalar_prefetch = 0 : i64, scratch_operands = 0 : i64, tpu.core_type = #tpu.core_type<tc>, window_params = [{transform_indices = @transform_0, window_bounds = array<i64: 16, 256>}, {transform_indices = @transform_1, window_bounds = array<i64: 1, 256>}, {transform_indices = @transform_2, window_bounds = array<i64: 16, 256>}]} {
    %c0 = arith.constant 0 : index
    %c0_0 = arith.constant 0 : index
    %0 = vector.load %arg2[%c0, %c0_0] : memref<16x256xf32, #tpu.memory_space<vmem>>, vector<16x256xf32>
    %c0_1 = arith.constant 0 : index
    %c0_2 = arith.constant 0 : index
    %1 = vector.load %arg3[%c0_1, %c0_2] : memref<1x256xf32, #tpu.memory_space<vmem>>, vector<1x256xf32>
    %2 = vector.broadcast %1 : vector<1x256xf32> to vector<16x256xf32>
    %3 = arith.mulf %0, %2 : vector<16x256xf32>
    %c0_3 = arith.constant 0 : index
    %c0_4 = arith.constant 0 : index
    %4 = vector.load %arg4[%c0_3, %c0_4] : memref<16x256xf32, #tpu.memory_space<vmem>>, vector<16x256xf32>
    tpu.vector_store %arg4[%c0_3, %c0_4], %3 {strides = array<i32>} : memref<16x256xf32, #tpu.memory_space<vmem>>, vector<16x256xf32>,
    return
  }
  func.func @transform_0(%arg0: i32, %arg1: i32) -> (i32, i32) {
    %c0_i32 = arith.constant 0 : i32
    return %arg0, %arg1 : i32, i32
  }
  func.func @transform_1(%arg0: i32, %arg1: i32) -> (i32, i32) {
    %c0_i32 = arith.constant 0 : i32
    %c0_i32_0 = arith.constant 0 : i32
    return %c0_i32, %arg1 : i32, i32
  }
  func.func @transform_2(%arg0: i32, %arg1: i32) -> (i32, i32) {
    %c0_i32 = arith.constant 0 : i32
    return %arg0, %arg1 : i32, i32
  }
}

</mosaic_0001>

<bundles_post_ra>
// kernel: tpu_custom_call.1
= control target key start
LH: loop header
LB: loop body
LE: loop exit
PB: predicated region body
PF: predicated region fallthrough
CT: control target
= control target key end

     0   :  { %7 = vsyncpa [#allocation3], 0  ;;  %s186_s0 = inlined_call_operand.hbm [shape: f32[16,256], index: 0, kind: input, shape index: {}]   ;;  %s187_s1 = inlined_call_operand.hbm [shape: f32[1,256], index: 1, kind: input, shape index: {}]   ;;  %s188_s2 = inlined_call_operand.hbm [shape: f32[16,256], index: 2, kind: output, shape index: {}]  }
   0x1   :  { %8 = vsyncpa [#allocation6], 0 }
   0x2   :  { %9 = vsyncpa [#allocation4], 0  ;;  %s151_s9 = smov [#allocation2]  }
   0x3   :  { %s15_s10 = sshll.u32 %s151_s9, 4  ;;  %s16_s10 = int_to_ptr.vmem [resolvable:$true] %s15_s10 }
   0x4   :  { %s93_s11 = scalar_lea.vmem %s16_s10, 512  ;;  %p98_p1 = scmp.lt.s32.totalorder %s16_s10, %s16_s10 }
   0x5   :  { %p94_p0 = scmp.ne.s32.totalorder %s16_s10, %s93_s11  ;;  %p99_p2 = scmp.lt.s32.totalorder %s93_s11, %s93_s11 }
   0x7   :  { %p100_p3 = por %p99_p2, %p98_p1 }
   0x9   :  { %p101_p4 = pnand %p100_p3, %p94_p0 }
   0xb   :  { %104 = shalt.err (!%p101_p4)
}
   0xc   :  { %s152_s12 = smov 256   ;;  %s153_s13 = smov 16  }
   0xd   :  { %21 = dma.hbm_to_vmem [thread:$0]  %s186_s0, 512, %s16_s10, [#allocation3], %s152_s12, %s152_s12, %s153_s13  }
   0xe   :  { %s154_s16 = smov [#allocation5]  }
   0xf   :  { %s28_s17 = sshll.u32 %s154_s16, 4  ;;  %s29_s17 = int_to_ptr.vmem [resolvable:$true] %s28_s17 }
  0x10   :  { %s113_s18 = scalar_lea.vmem %s29_s17, 32  ;;  %p118_p6 = scmp.lt.s32.totalorder %s29_s17, %s29_s17 }
  0x11   :  { %p114_p5 = scmp.ne.s32.totalorder %s29_s17, %s113_s18  ;;  %p119_p7 = scmp.lt.s32.totalorder %s113_s18, %s113_s18 }
  0x13   :  { %p120_p8 = por %p119_p7, %p118_p6 }
  0x15   :  { %p121_p9 = pnand %p120_p8, %p114_p5 }
  0x17   :  { %124 = shalt.err (!%p121_p9)
}
  0x18   :  { %31 = dma.hbm_to_vmem [thread:$0]  %s187_s1, 32, %s29_s17, [#allocation6]  }
  0x19   :  { %145 = dma.done.wait [#allocation3], 512  }
  0x1a   :  { %146 = vsyncadd [#allocation3], 4294966784 }
  0x1b   :  { %147 = dma.done.wait [#allocation6], 32  }
  0x1c   :  { %148 = vsyncadd [#allocation6], 4294967264  ;;  %v44_v0 = vlaneseq  ;;  %v38_v4 = vld [vmem:[#allocation2] sm:$0xff]  ;;  %v39_v6 = vld [vmem:[#allocation2 + $0x8] sm:$0xff]  ;;  %s155_s0 = smov [#allocation7]  }
  0x1d   :  { %v42_v5 = vld [vmem:[#allocation5] sm:$0x3]  ;;  %s67_s21 = sshll.u32 %s155_s0, 4  ;;  %v40_v9 = vld [vmem:[#allocation2 + $0x10] sm:$0xff]  ;;  %v41_v10 = vld [vmem:[#allocation2 + $0x18] sm:$0xff]  ;;  %s68_s21 = int_to_ptr.vmem [resolvable:$true] %s67_s21 }
  0x1e   :  { %v45_v1 = vshrl.u32 %v44_v0, 7  ;;  %s125_s1 = scalar_lea.vmem %s68_s21, 512  ;;  %p130_p11 = scmp.lt.s32.totalorder %s68_s21, %s68_s21 }
  0x1f   :  { %p126_p10 = scmp.ne.s32.totalorder %s68_s21, %s125_s1  ;;  %p131_p12 = scmp.lt.s32.totalorder %s125_s1, %s125_s1 }
  0x20   :  { %v46_v2 = vsub.s32 0, %v45_v1  ;;  %v50_v3 = vsub.s32 1, %v45_v1 }
  0x21   :  { %p132_p13 = por %p131_p12, %p130_p11 }
  0x22   :  { %v47_v7 = vrot.slane %v42_v5, %v46_v2  ;;  %v51_v8 = vrot.slane %v42_v5, %v50_v3 }
  0x23   :  { %p133_p0 = pnand %p132_p13, %p126_p10 }
  0x24   :  { %v54_v11 = vmul.f32 %v47_v7, %v38_v4  ;;  %v55_v12 = vmul.f32 %v51_v8, %v39_v6  ;;  %v56_v13 = vmul.f32 %v47_v7, %v40_v9  ;;  %v57_v14 = vmul.f32 %v51_v8, %v41_v10 }
  0x26   :  { %58 = vst [vmem:[#allocation7] sm:$0xff] %v54_v11  ;;  %59 = vst [vmem:[#allocation7 + $0x8] sm:$0xff] %v55_v12 }
  0x27   :  { %60 = vst [vmem:[#allocation7 + $0x10] sm:$0xff] %v56_v13  ;;  %61 = vst [vmem:[#allocation7 + $0x18] sm:$0xff] %v57_v14 }
  0x28   :  { %136 = shalt.err (!%p133_p0)
}
  0x29   :  { %73 = dma.vmem_to_hbm [thread:$0]  %s68_s21, 512, %s188_s2, [#allocation4], %s152_s12, %s152_s12, %s153_s13  }
  0x2a   :  { %149 = dma.done.wait [#allocation4], 512  }
  0x2b   :  { %150 = vsyncadd [#allocation4], 4294966784 }
  0x2c   :  { %77 = vsyncpa [#allocation3], 1 }
  0x2d   :  { %78 = vsyncpa [#allocation6], 1 }
  0x2e   :  { %79 = vsyncpa [#allocation4], 1 }

</bundles_post_ra>
